<compile_context>
chip_gen: v7x
topology: tpu7x:2x2x1
jax: 0.10.0
libtpu: 0.0.40
codegen_flags: <defaults>
</compile_context>

<pallas_src>
import jax
import jax.numpy as jnp
from jax import lax
from jax.experimental import pallas as pl
from jax.experimental.pallas import tpu as pltpu


# ----------------------------- configuration --------------------------------
BATCH = 2
SEQ_LEN = 8                      # time_steps
FEATURE_DIMS = (16, 8, 12)       # (text, audio, video) input feature dims
HIDDEN_DIMS = (8, 4, 4)          # (text, audio, video) LSTM hidden dims
LEN = sum(HIDDEN_DIMS)           # 16
F_TOTAL = sum(FEATURE_DIMS)      # 36
TIME_WINDOW = 2
EXTENDED_DIM = TIME_WINDOW * LEN + 1   # 33
OUTPUT_DIM = 3
RANK = 4
STRIDE = 2
IDX = tuple(STRIDE * i for i in range(SEQ_LEN // STRIDE))   # (0, 2, 4, 6)


# --------------------- pure-JAX reference (for checking) ---------------------
def lstm_forward(x, w_ih, w_hh, b_ih, b_hh):
    """Single-layer unidirectional LSTM, batch_first, zero init state.
    x: (B, T, in); w_ih: (4H, in); w_hh: (4H, H); gate order i, f, g, o."""
    B, T, _ = x.shape
    H = w_hh.shape[1]

    def step(carry, xt):
        h, c = carry
        gates = xt @ w_ih.T + h @ w_hh.T + b_ih + b_hh
        i, f, g, o = jnp.split(gates, 4, axis=-1)
        i = jax.nn.sigmoid(i)
        f = jax.nn.sigmoid(f)
        g = jnp.tanh(g)
        o = jax.nn.sigmoid(o)
        c = f * c + i * g
        h = o * jnp.tanh(c)
        return (h, c), h

    init = (jnp.zeros((B, H), x.dtype), jnp.zeros((B, H), x.dtype))
    _, hs = lax.scan(step, init, jnp.swapaxes(x, 0, 1))
    return jnp.swapaxes(hs, 0, 1)


def time_extend_jax(z, time_window):
    """(B, T, L) -> (B, T, 1 + time_window*L), circular wrap over time."""
    B, T, _ = z.shape
    parts = [jnp.ones((B, T, 1), z.dtype)]
    for j in range(time_window):
        parts.append(jnp.roll(z, shift=-j, axis=1))
    return jnp.concatenate(parts, axis=2)


def tpfn_reference(params, text, audio, vision):
    audio_h = lstm_forward(audio, params["audio_w_ih"], params["audio_w_hh"],
                           params["audio_b_ih"], params["audio_b_hh"])
    video_h = lstm_forward(vision, params["video_w_ih"], params["video_w_hh"],
                           params["video_b_ih"], params["video_b_hh"])
    text_h = lstm_forward(text, params["text_w_ih"], params["text_w_hh"],
                          params["text_b_ih"], params["text_b_hh"])
    z = jnp.concatenate((audio_h, video_h, text_h), axis=2)
    z_ext = time_extend_jax(z, TIME_WINDOW)
    n = len(IDX)
    acc = None
    for i in IDX:
        a = z[:, i, :] @ params["w1"] + params["b1"]
        b = z_ext[:, i, :] @ params["w2"] + params["b2"]
        term = a * b / n
        acc = term if acc is None else acc + term
    z_fusion = acc.reshape(-1, RANK, OUTPUT_DIM)
    out = jnp.einsum("r,bro->bo", params["fusion_weights"][0], z_fusion)
    norm = jnp.sum(jnp.linalg.norm(z.reshape(z.shape[0], -1), axis=1)) / z.shape[0]
    return out, norm


# ----------------------------- Pallas kernel ---------------------------------
def _tpfn_fused_kernel(x_ref, wa_ref, wb_ref, out_ref):
    """Fully fused TPFN forward, single grid-free invocation.

    x_ref  : (T*B, F_TOTAL) time-major packed features [audio|video|text]
    wa_ref : (L + F_TOTAL + 1, 4L) slab: [whh | wih_stacked | bg]
    wb_ref : ((1 + TIME_WINDOW)*L + 3, RO) slab: [w1 | w2_off0 | w2_off1 | b1 | w2_const | fw]
    out_ref: (B, OUTPUT_DIM + 1); last column holds the norm.
    """
    f32 = jnp.float32
    T = SEQ_LEN
    L = LEN
    FT = F_TOTAL
    OUT = OUTPUT_DIM
    RO = RANK * OUT
    TB = x_ref.shape[0]
    B = TB // T

    # ---- unpack weight slabs (loaded once, static slices of VMEM arrays)
    wa = wa_ref[...]
    whh = wa[0:L, :]                                  # (L, 4L)
    wih = wa[L:L + FT, :]                             # (FT, 4L)
    bg = wa[L + FT:L + FT + 1, :]                     # (1, 4L)

    wb = wb_ref[...]
    w1 = wb[0:L, :]                                   # (L, RO)
    w2_blocks = [wb[(1 + j) * L:(2 + j) * L, :] for j in range(TIME_WINDOW)]
    bias_base = (1 + TIME_WINDOW) * L
    b1 = wb[bias_base:bias_base + 1, :]               # (1, RO)
    w2c = wb[bias_base + 1:bias_base + 2, :]          # (1, RO) == w2[0] + b2
    fw = wb[bias_base + 2:bias_base + 3, :]           # (1, RO) == repeat(fw/|idx|)

    # ---- 1. merged input->gate matmul for ALL timesteps (single MXU dot)
    xg = jnp.dot(x_ref[...], wih, preferred_element_type=f32) + bg    # (T*B, 4L)

    # ---- 2. combined LSTM recurrence (h == z[:, t, :]), unrolled over T.
    #         gate column layout: [ i | f | o | g ]  ->  one sigmoid on 3L.
    h = jnp.zeros((B, L), f32)
    c = jnp.zeros((B, L), f32)
    sq = jnp.zeros((B, L), f32)
    hs = []
    for t in range(T):
        gates = xg[t * B:(t + 1) * B, :] + jnp.dot(h, whh, preferred_element_type=f32)
        sig = jax.nn.sigmoid(gates[:, 0:3 * L])       # i|f|o in one EUP pass
        g_g = jnp.tanh(gates[:, 3 * L:4 * L])
        i_g = sig[:, 0:L]
        f_g = sig[:, L:2 * L]
        o_g = sig[:, 2 * L:3 * L]
        c = f_g * c + i_g * g_g
        h = o_g * jnp.tanh(c)
        sq = sq + h * h
        hs.append(h)

    # ---- 3. fusion: one stacked (T*B, L) slab, matmuls over all rows,
    #         idx / (i+j)%T selection via static slices (no per-idx concat).
    z_stack = jnp.concatenate(hs, axis=0)                               # (T*B, L)
    a_all = jnp.dot(z_stack, w1, preferred_element_type=f32) + b1       # (T*B, RO)
    b_all = [jnp.dot(z_stack, w2_blocks[j], preferred_element_type=f32)
             for j in range(TIME_WINDOW)]                               # each (T*B, RO)

    acc = jnp.zeros((B, RO), f32)
    for i in IDX:
        b_term = w2c
        for j in range(TIME_WINDOW):
            tj = (i + j) % T
            b_term = b_term + b_all[j][tj * B:(tj + 1) * B, :]
        acc = acc + a_all[i * B:(i + 1) * B, :] * b_term

    # ---- 4. rank contraction on the VPU (1/|idx| folded into fw).
    weighted = acc * fw                                                  # (B, RO)
    out = weighted[:, 0:OUT]
    for r in range(1, RANK):
        out = out + weighted[:, r * OUT:(r + 1) * OUT]

    # ---- 5. norm = sum_b || z_b ||_2 / B, folded into the spare output column.
    per_b = jnp.sqrt(jnp.sum(sq, axis=1, keepdims=True))                 # (B, 1)
    norm11 = jnp.sum(per_b, axis=0, keepdims=True) * (1.0 / B)           # (1, 1)
    norm_col = jnp.zeros((B, 1), f32) + norm11                           # (B, 1)

    out_ref[...] = jnp.concatenate([out, norm_col], axis=1)              # (B, OUT+1)


def tpfn_fused_forward(fused, text, audio, vision):
    B, T, _ = audio.shape
    # Pack modalities (column order must match the stacked W_ih: audio|video|text)
    # and go time-major so the kernel's per-step slices are contiguous rows.
    x = jnp.concatenate([audio, vision, text], axis=2)                   # (B, T, 36)
    x_tm = jnp.swapaxes(x, 0, 1).reshape(T * B, -1)                      # (T*B, 36)

    vmem = pl.BlockSpec(memory_space=pltpu.MemorySpace.VMEM)
    packed = pl.pallas_call(
        _tpfn_fused_kernel,
        out_shape=jax.ShapeDtypeStruct((B, OUTPUT_DIM + 1), jnp.float32),
        in_specs=[vmem, vmem, vmem],
        out_specs=vmem,
    )(x_tm, fused["slab_a"], fused["slab_b"])
    return packed[:, :OUTPUT_DIM], packed[0, OUTPUT_DIM]


# ----------------------- parameter init & preparation ------------------------
def init_params(key):
    """Parameters in the original (torch-layout) form."""
    params = {}
    names = ("text", "audio", "video")
    for name, in_size, hid in zip(names, FEATURE_DIMS, HIDDEN_DIMS):
        key, k1, k2, k3, k4 = jax.random.split(key, 5)
        params[f"{name}_w_ih"] = 0.1 * jax.random.normal(k1, (4 * hid, in_size), jnp.float32)
        params[f"{name}_w_hh"] = 0.1 * jax.random.normal(k2, (4 * hid, hid), jnp.float32)
        params[f"{name}_b_ih"] = 0.1 * jax.random.normal(k3, (4 * hid,), jnp.float32)
        params[f"{name}_b_hh"] = 0.1 * jax.random.normal(k4, (4 * hid,), jnp.float32)
    ro = RANK * OUTPUT_DIM
    key, k1, k2, k3, k4, k5 = jax.random.split(key, 6)
    params["w1"] = 0.1 * jax.random.normal(k1, (LEN, ro), jnp.float32)
    params["b1"] = 0.1 * jax.random.normal(k2, (1, ro), jnp.float32)
    params["w2"] = 0.1 * jax.random.normal(k3, (EXTENDED_DIM, ro), jnp.float32)
    params["b2"] = 0.1 * jax.random.normal(k4, (1, ro), jnp.float32)
    # xavier_normal_ on (1, RANK): std = sqrt(2 / (1 + RANK))
    params["fusion_weights"] = (
        jnp.sqrt(2.0 / (1 + RANK)) * jax.random.normal(k5, (1, RANK), jnp.float32)
    )
    return params


def prepare_fused_params(params):
    """One-time rearrangement of the torch-layout parameters into the two
    packed slabs consumed by the fused kernel (3 input DMAs total)."""
    G = 4 * LEN
    # order must match z = concat(audio_h, video_h, text_h) and the packed input
    # column order [audio | video | text].
    order = (("audio", HIDDEN_DIMS[1], FEATURE_DIMS[1]),
             ("video", HIDDEN_DIMS[2], FEATURE_DIMS[2]),
             ("text", HIDDEN_DIMS[0], FEATURE_DIMS[0]))
    # torch gate order (i, f, g, o) -> kernel column blocks (i, f, o, g)
    gate_to_block = (0, 1, 3, 2)

    whh = jnp.zeros((LEN, G), jnp.float32)
    wih = jnp.zeros((F_TOTAL, G), jnp.float32)
    bg = jnp.zeros((1, G), jnp.float32)
    h_off = 0
    f_off = 0
    for name, H, I in order:
        w_ih = params[f"{name}_w_ih"]                         # (4H, I)
        w_hh = params[f"{name}_w_hh"]                         # (4H, H)
        b = params[f"{name}_b_ih"] + params[f"{name}_b_hh"]   # (4H,)
        for tg in range(4):
            cb = gate_to_block[tg]
            col = cb * LEN + h_off
            wih = wih.at[f_off:f_off + I, col:col + H].set(w_ih[tg * H:(tg + 1) * H, :].T)
            whh = whh.at[h_off:h_off + H, col:col + H].set(w_hh[tg * H:(tg + 1) * H, :].T)
            bg = bg.at[0, col:col + H].set(b[tg * H:(tg + 1) * H])
        h_off += H
        f_off += I

    # slab A: [whh (L rows) | wih (F_TOTAL rows) | bg (1 row)]  -> (53, 64)
    slab_a = jnp.concatenate([whh, wih, bg], axis=0)

    w2 = params["w2"]
    w2_rest = w2[1:1 + TIME_WINDOW * LEN, :]                  # (TW*LEN, RO)
    w2_const = w2[0:1, :] + params["b2"]                      # ones column + b2
    fw_exp = jnp.repeat(params["fusion_weights"] / len(IDX), OUTPUT_DIM, axis=1)
    # slab B: [w1 | w2_off0 | w2_off1 | b1 | w2_const | fw_exp] -> (51, 12)
    slab_b = jnp.concatenate([params["w1"], w2_rest, params["b1"], w2_const, fw_exp],
                             axis=0)

    return {"slab_a": slab_a, "slab_b": slab_b}


# ----------------------------------- main ------------------------------------
if __name__ == "__main__":
    key = jax.random.PRNGKey(0)
    key, kp, kt, ka, kv = jax.random.split(key, 5)
    params = init_params(kp)
    fused = prepare_fused_params(params)

    # TODO(synk): text would normally go through BertTextEncoder + AlignSubNet;
    # here we feed already-aligned per-timestep features.
    text = jax.random.normal(kt, (BATCH, SEQ_LEN, FEATURE_DIMS[0]), jnp.float32)
    audio = jax.random.normal(ka, (BATCH, SEQ_LEN, FEATURE_DIMS[1]), jnp.float32)
    vision = jax.random.normal(kv, (BATCH, SEQ_LEN, FEATURE_DIMS[2]), jnp.float32)

    fwd = jax.jit(tpfn_fused_forward)
    output, norm = fwd(fused, text, audio, vision)
    output = jax.block_until_ready(output)
    norm = jax.block_until_ready(norm)

    ref_out, ref_norm = tpfn_reference(params, text, audio, vision)
    assert output.shape == (BATCH, OUTPUT_DIM)
    assert jnp.allclose(output, ref_out, atol=1e-3, rtol=1e-3)
    assert jnp.allclose(norm, ref_norm, atol=1e-3, rtol=1e-3)

    print("KERNEL_OK")
</pallas_src>

<mosaic_0001>
module attributes {stable_mosaic.version = 11 : i64} {
  func.func @_tpfn_fused_kernel(%arg0: memref<16x36xf32, #tpu.memory_space<vmem>>, %arg1: memref<53x64xf32, #tpu.memory_space<vmem>>, %arg2: memref<51x12xf32, #tpu.memory_space<vmem>>, %arg3: memref<2x4xf32, #tpu.memory_space<vmem>>) attributes {dimension_semantics = [], scalar_prefetch = 0 : i64, scratch_operands = 0 : i64, tpu.core_type = #tpu.core_type<tc>} {
    %c0 = arith.constant 0 : index
    %c0_0 = arith.constant 0 : index
    %0 = vector.load %arg1[%c0, %c0_0] : memref<53x64xf32, #tpu.memory_space<vmem>>, vector<53x64xf32>
    %1 = vector.extract_strided_slice %0 {offsets = [0, 0], sizes = [16, 64], strides = [1, 1]} : vector<53x64xf32> to vector<16x64xf32>
    %2 = vector.extract_strided_slice %0 {offsets = [16, 0], sizes = [36, 64], strides = [1, 1]} : vector<53x64xf32> to vector<36x64xf32>
    %3 = vector.extract_strided_slice %0 {offsets = [52, 0], sizes = [1, 64], strides = [1, 1]} : vector<53x64xf32> to vector<1x64xf32>
    %c0_1 = arith.constant 0 : index
    %c0_2 = arith.constant 0 : index
    %4 = vector.load %arg2[%c0_1, %c0_2] : memref<51x12xf32, #tpu.memory_space<vmem>>, vector<51x12xf32>
    %5 = vector.extract_strided_slice %4 {offsets = [0, 0], sizes = [16, 12], strides = [1, 1]} : vector<51x12xf32> to vector<16x12xf32>
    %6 = vector.extract_strided_slice %4 {offsets = [16, 0], sizes = [16, 12], strides = [1, 1]} : vector<51x12xf32> to vector<16x12xf32>
    %7 = vector.extract_strided_slice %4 {offsets = [32, 0], sizes = [16, 12], strides = [1, 1]} : vector<51x12xf32> to vector<16x12xf32>
    %8 = vector.extract_strided_slice %4 {offsets = [48, 0], sizes = [1, 12], strides = [1, 1]} : vector<51x12xf32> to vector<1x12xf32>
    %9 = vector.extract_strided_slice %4 {offsets = [49, 0], sizes = [1, 12], strides = [1, 1]} : vector<51x12xf32> to vector<1x12xf32>
    %10 = vector.extract_strided_slice %4 {offsets = [50, 0], sizes = [1, 12], strides = [1, 1]} : vector<51x12xf32> to vector<1x12xf32>
    %c0_3 = arith.constant 0 : index
    %c0_4 = arith.constant 0 : index
    %11 = vector.load %arg0[%c0_3, %c0_4] : memref<16x36xf32, #tpu.memory_space<vmem>>, vector<16x36xf32>
    %cst = arith.constant dense<0.000000e+00> : vector<16x64xf32>
    %12 = tpu.matmul %11, %2, %cst {dimension_numbers = #tpu.dot_dimension_numbers<[1], [0], [0], [1], [0, 0, 1, 1], [], []>} : vector<16x36xf32>, vector<36x64xf32>, vector<16x64xf32> -> vector<16x64xf32>
    %13 = vector.broadcast %3 : vector<1x64xf32> to vector<16x64xf32>
    %14 = arith.addf %12, %13 : vector<16x64xf32>
    %cst_5 = arith.constant 0.000000e+00 : f32
    %15 = vector.broadcast %cst_5 : f32 to vector<2x16xf32>
    %cst_6 = arith.constant 0.000000e+00 : f32
    %16 = vector.broadcast %cst_6 : f32 to vector<2x16xf32>
    %cst_7 = arith.constant 0.000000e+00 : f32
    %17 = vector.broadcast %cst_7 : f32 to vector<2x16xf32>
    %18 = vector.extract_strided_slice %14 {offsets = [0, 0], sizes = [2, 64], strides = [1, 1]} : vector<16x64xf32> to vector<2x64xf32>
    %cst_8 = arith.constant dense<0.000000e+00> : vector<2x64xf32>
    %19 = tpu.matmul %15, %1, %cst_8 {dimension_numbers = #tpu.dot_dimension_numbers<[1], [0], [0], [1], [0, 0, 1, 1], [], []>} : vector<2x16xf32>, vector<16x64xf32>, vector<2x64xf32> -> vector<2x64xf32>
    %20 = arith.addf %18, %19 : vector<2x64xf32>
    %21 = vector.extract_strided_slice %20 {offsets = [0, 0], sizes = [2, 48], strides = [1, 1]} : vector<2x64xf32> to vector<2x48xf32>
    %22 = arith.negf %21 : vector<2x48xf32>
    %23 = math.exp %22 : vector<2x48xf32>
    %cst_9 = arith.constant 1.000000e+00 : f32
    %24 = vector.broadcast %cst_9 : f32 to vector<2x48xf32>
    %25 = arith.addf %24, %23 : vector<2x48xf32>
    %26 = arith.divf %24, %25 : vector<2x48xf32>
    %27 = vector.extract_strided_slice %20 {offsets = [0, 48], sizes = [2, 16], strides = [1, 1]} : vector<2x64xf32> to vector<2x16xf32>
    %28 = math.tanh %27 : vector<2x16xf32>
    %29 = vector.extract_strided_slice %26 {offsets = [0, 0], sizes = [2, 16], strides = [1, 1]} : vector<2x48xf32> to vector<2x16xf32>
    %30 = vector.extract_strided_slice %26 {offsets = [0, 16], sizes = [2, 16], strides = [1, 1]} : vector<2x48xf32> to vector<2x16xf32>
    %31 = vector.extract_strided_slice %26 {offsets = [0, 32], sizes = [2, 16], strides = [1, 1]} : vector<2x48xf32> to vector<2x16xf32>
    %32 = arith.mulf %30, %16 : vector<2x16xf32>
    %33 = arith.mulf %29, %28 : vector<2x16xf32>
    %34 = arith.addf %32, %33 : vector<2x16xf32>
    %35 = math.tanh %34 : vector<2x16xf32>
    %36 = arith.mulf %31, %35 : vector<2x16xf32>
    %37 = arith.mulf %36, %36 : vector<2x16xf32>
    %38 = arith.addf %17, %37 : vector<2x16xf32>
    %39 = vector.extract_strided_slice %14 {offsets = [2, 0], sizes = [2, 64], strides = [1, 1]} : vector<16x64xf32> to vector<2x64xf32>
    %cst_10 = arith.constant dense<0.000000e+00> : vector<2x64xf32>
    %40 = tpu.matmul %36, %1, %cst_10 {dimension_numbers = #tpu.dot_dimension_numbers<[1], [0], [0], [1], [0, 0, 1, 1], [], []>} : vector<2x16xf32>, vector<16x64xf32>, vector<2x64xf32> -> vector<2x64xf32>
    %41 = arith.addf %39, %40 : vector<2x64xf32>
    %42 = vector.extract_strided_slice %41 {offsets = [0, 0], sizes = [2, 48], strides = [1, 1]} : vector<2x64xf32> to vector<2x48xf32>
    %43 = arith.negf %42 : vector<2x48xf32>
    %44 = math.exp %43 : vector<2x48xf32>
    %cst_11 = arith.constant 1.000000e+00 : f32
    %45 = vector.broadcast %cst_11 : f32 to vector<2x48xf32>
    %46 = arith.addf %45, %44 : vector<2x48xf32>
    %47 = arith.divf %45, %46 : vector<2x48xf32>
    %48 = vector.extract_strided_slice %41 {offsets = [0, 48], sizes = [2, 16], strides = [1, 1]} : vector<2x64xf32> to vector<2x16xf32>
    %49 = math.tanh %48 : vector<2x16xf32>
    %50 = vector.extract_strided_slice %47 {offsets = [0, 0], sizes = [2, 16], strides = [1, 1]} : vector<2x48xf32> to vector<2x16xf32>
    %51 = vector.extract_strided_slice %47 {offsets = [0, 16], sizes = [2, 16], strides = [1, 1]} : vector<2x48xf32> to vector<2x16xf32>
    %52 = vector.extract_strided_slice %47 {offsets = [0, 32], sizes = [2, 16], strides = [1, 1]} : vector<2x48xf32> to vector<2x16xf32>
    %53 = arith.mulf %51, %34 : vector<2x16xf32>
    %54 = arith.mulf %50, %49 : vector<2x16xf32>
    %55 = arith.addf %53, %54 : vector<2x16xf32>
    %56 = math.tanh %55 : vector<2x16xf32>
    %57 = arith.mulf %52, %56 : vector<2x16xf32>
    %58 = arith.mulf %57, %57 : vector<2x16xf32>
    %59 = arith.addf %38, %58 : vector<2x16xf32>
    %60 = vector.extract_strided_slice %14 {offsets = [4, 0], sizes = [2, 64], strides = [1, 1]} : vector<16x64xf32> to vector<2x64xf32>
    %cst_12 = arith.constant dense<0.000000e+00> : vector<2x64xf32>
    %61 = tpu.matmul %57, %1, %cst_12 {dimension_numbers = #tpu.dot_dimension_numbers<[1], [0], [0], [1], [0, 0, 1, 1], [], []>} : vector<2x16xf32>, vector<16x64xf32>, vector<2x64xf32> -> vector<2x64xf32>
    %62 = arith.addf %60, %61 : vector<2x64xf32>
    %63 = vector.extract_strided_slice %62 {offsets = [0, 0], sizes = [2, 48], strides = [1, 1]} : vector<2x64xf32> to vector<2x48xf32>
    %64 = arith.negf %63 : vector<2x48xf32>
    %65 = math.exp %64 : vector<2x48xf32>
    %cst_13 = arith.constant 1.000000e+00 : f32
    %66 = vector.broadcast %cst_13 : f32 to vector<2x48xf32>
    %67 = arith.addf %66, %65 : vector<2x48xf32>
    %68 = arith.divf %66, %67 : vector<2x48xf32>
    %69 = vector.extract_strided_slice %62 {offsets = [0, 48], sizes = [2, 16], strides = [1, 1]} : vector<2x64xf32> to vector<2x16xf32>
    %70 = math.tanh %69 : vector<2x16xf32>
    %71 = vector.extract_strided_slice %68 {offsets = [0, 0], sizes = [2, 16], strides = [1, 1]} : vector<2x48xf32> to vector<2x16xf32>
    %72 = vector.extract_strided_slice %68 {offsets = [0, 16], sizes = [2, 16], strides = [1, 1]} : vector<2x48xf32> to vector<2x16xf32>
    %73 = vector.extract_strided_slice %68 {offsets = [0, 32], sizes = [2, 16], strides = [1, 1]} : vector<2x48xf32> to vector<2x16xf32>
    %74 = arith.mulf %72, %55 : vector<2x16xf32>
    %75 = arith.mulf %71, %70 : vector<2x16xf32>
    %76 = arith.addf %74, %75 : vector<2x16xf32>
    %77 = math.tanh %76 : vector<2x16xf32>
    %78 = arith.mulf %73, %77 : vector<2x16xf32>
    %79 = arith.mulf %78, %78 : vector<2x16xf32>
    %80 = arith.addf %59, %79 : vector<2x16xf32>
    %81 = vector.extract_strided_slice %14 {offsets = [6, 0], sizes = [2, 64], strides = [1, 1]} : vector<16x64xf32> to vector<2x64xf32>
    %cst_14 = arith.constant dense<0.000000e+00> : vector<2x64xf32>
    %82 = tpu.matmul %78, %1, %cst_14 {dimension_numbers = #tpu.dot_dimension_numbers<[1], [0], [0], [1], [0, 0, 1, 1], [], []>} : vector<2x16xf32>, vector<16x64xf32>, vector<2x64xf32> -> vector<2x64xf32>
    %83 = arith.addf %81, %82 : vector<2x64xf32>
    %84 = vector.extract_strided_slice %83 {offsets = [0, 0], sizes = [2, 48], strides = [1, 1]} : vector<2x64xf32> to vector<2x48xf32>
    %85 = arith.negf %84 : vector<2x48xf32>
    %86 = math.exp %85 : vector<2x48xf32>
    %cst_15 = arith.constant 1.000000e+00 : f32
    %87 = vector.broadcast %cst_15 : f32 to vector<2x48xf32>
    %88 = arith.addf %87, %86 : vector<2x48xf32>
    %89 = arith.divf %87, %88 : vector<2x48xf32>
    %90 = vector.extract_strided_slice %83 {offsets = [0, 48], sizes = [2, 16], strides = [1, 1]} : vector<2x64xf32> to vector<2x16xf32>
    %91 = math.tanh %90 : vector<2x16xf32>
    %92 = vector.extract_strided_slice %89 {offsets = [0, 0], sizes = [2, 16], strides = [1, 1]} : vector<2x48xf32> to vector<2x16xf32>
    %93 = vector.extract_strided_slice %89 {offsets = [0, 16], sizes = [2, 16], strides = [1, 1]} : vector<2x48xf32> to vector<2x16xf32>
    %94 = vector.extract_strided_slice %89 {offsets = [0, 32], sizes = [2, 16], strides = [1, 1]} : vector<2x48xf32> to vector<2x16xf32>
    %95 = arith.mulf %93, %76 : vector<2x16xf32>
    %96 = arith.mulf %92, %91 : vector<2x16xf32>
    %97 = arith.addf %95, %96 : vector<2x16xf32>
    %98 = math.tanh %97 : vector<2x16xf32>
    %99 = arith.mulf %94, %98 : vector<2x16xf32>
    %100 = arith.mulf %99, %99 : vector<2x16xf32>
    %101 = arith.addf %80, %100 : vector<2x16xf32>
    %102 = vector.extract_strided_slice %14 {offsets = [8, 0], sizes = [2, 64], strides = [1, 1]} : vector<16x64xf32> to vector<2x64xf32>
    %cst_16 = arith.constant dense<0.000000e+00> : vector<2x64xf32>
    %103 = tpu.matmul %99, %1, %cst_16 {dimension_numbers = #tpu.dot_dimension_numbers<[1], [0], [0], [1], [0, 0, 1, 1], [], []>} : vector<2x16xf32>, vector<16x64xf32>, vector<2x64xf32> -> vector<2x64xf32>
    %104 = arith.addf %102, %103 : vector<2x64xf32>
    %105 = vector.extract_strided_slice %104 {offsets = [0, 0], sizes = [2, 48], strides = [1, 1]} : vector<2x64xf32> to vector<2x48xf32>
    %106 = arith.negf %105 : vector<2x48xf32>
    %107 = math.exp %106 : vector<2x48xf32>
    %cst_17 = arith.constant 1.000000e+00 : f32
    %108 = vector.broadcast %cst_17 : f32 to vector<2x48xf32>
    %109 = arith.addf %108, %107 : vector<2x48xf32>
    %110 = arith.divf %108, %109 : vector<2x48xf32>
    %111 = vector.extract_strided_slice %104 {offsets = [0, 48], sizes = [2, 16], strides = [1, 1]} : vector<2x64xf32> to vector<2x16xf32>
    %112 = math.tanh %111 : vector<2x16xf32>
    %113 = vector.extract_strided_slice %110 {offsets = [0, 0], sizes = [2, 16], strides = [1, 1]} : vector<2x48xf32> to vector<2x16xf32>
    %114 = vector.extract_strided_slice %110 {offsets = [0, 16], sizes = [2, 16], strides = [1, 1]} : vector<2x48xf32> to vector<2x16xf32>
    %115 = vector.extract_strided_slice %110 {offsets = [0, 32], sizes = [2, 16], strides = [1, 1]} : vector<2x48xf32> to vector<2x16xf32>
    %116 = arith.mulf %114, %97 : vector<2x16xf32>
    %117 = arith.mulf %113, %112 : vector<2x16xf32>
    %118 = arith.addf %116, %117 : vector<2x16xf32>
    %119 = math.tanh %118 : vector<2x16xf32>
    %120 = arith.mulf %115, %119 : vector<2x16xf32>
    %121 = arith.mulf %120, %120 : vector<2x16xf32>
    %122 = arith.addf %101, %121 : vector<2x16xf32>
    %123 = vector.extract_strided_slice %14 {offsets = [10, 0], sizes = [2, 64], strides = [1, 1]} : vector<16x64xf32> to vector<2x64xf32>
    %cst_18 = arith.constant dense<0.000000e+00> : vector<2x64xf32>
    %124 = tpu.matmul %120, %1, %cst_18 {dimension_numbers = #tpu.dot_dimension_numbers<[1], [0], [0], [1], [0, 0, 1, 1], [], []>} : vector<2x16xf32>, vector<16x64xf32>, vector<2x64xf32> -> vector<2x64xf32>
    %125 = arith.addf %123, %124 : vector<2x64xf32>
    %126 = vector.extract_strided_slice %125 {offsets = [0, 0], sizes = [2, 48], strides = [1, 1]} : vector<2x64xf32> to vector<2x48xf32>
    %127 = arith.negf %126 : vector<2x48xf32>
    %128 = math.exp %127 : vector<2x48xf32>
    %cst_19 = arith.constant 1.000000e+00 : f32
    %129 = vector.broadcast %cst_19 : f32 to vector<2x48xf32>
    %130 = arith.addf %129, %128 : vector<2x48xf32>
    %131 = arith.divf %129, %130 : vector<2x48xf32>
    %132 = vector.extract_strided_slice %125 {offsets = [0, 48], sizes = [2, 16], strides = [1, 1]} : vector<2x64xf32> to vector<2x16xf32>
    %133 = math.tanh %132 : vector<2x16xf32>
    %134 = vector.extract_strided_slice %131 {offsets = [0, 0], sizes = [2, 16], strides = [1, 1]} : vector<2x48xf32> to vector<2x16xf32>
    %135 = vector.extract_strided_slice %131 {offsets = [0, 16], sizes = [2, 16], strides = [1, 1]} : vector<2x48xf32> to vector<2x16xf32>
    %136 = vector.extract_strided_slice %131 {offsets = [0, 32], sizes = [2, 16], strides = [1, 1]} : vector<2x48xf32> to vector<2x16xf32>
    %137 = arith.mulf %135, %118 : vector<2x16xf32>
    %138 = arith.mulf %134, %133 : vector<2x16xf32>
    %139 = arith.addf %137, %138 : vector<2x16xf32>
    %140 = math.tanh %139 : vector<2x16xf32>
    %141 = arith.mulf %136, %140 : vector<2x16xf32>
    %142 = arith.mulf %141, %141 : vector<2x16xf32>
    %143 = arith.addf %122, %142 : vector<2x16xf32>
    %144 = vector.extract_strided_slice %14 {offsets = [12, 0], sizes = [2, 64], strides = [1, 1]} : vector<16x64xf32> to vector<2x64xf32>
    %cst_20 = arith.constant dense<0.000000e+00> : vector<2x64xf32>
    %145 = tpu.matmul %141, %1, %cst_20 {dimension_numbers = #tpu.dot_dimension_numbers<[1], [0], [0], [1], [0, 0, 1, 1], [], []>} : vector<2x16xf32>, vector<16x64xf32>, vector<2x64xf32> -> vector<2x64xf32>
    %146 = arith.addf %144, %145 : vector<2x64xf32>
    %147 = vector.extract_strided_slice %146 {offsets = [0, 0], sizes = [2, 48], strides = [1, 1]} : vector<2x64xf32> to vector<2x48xf32>
    %148 = arith.negf %147 : vector<2x48xf32>
    %149 = math.exp %148 : vector<2x48xf32>
    %cst_21 = arith.constant 1.000000e+00 : f32
    %150 = vector.broadcast %cst_21 : f32 to vector<2x48xf32>
    %151 = arith.addf %150, %149 : vector<2x48xf32>
    %152 = arith.divf %150, %151 : vector<2x48xf32>
    %153 = vector.extract_strided_slice %146 {offsets = [0, 48], sizes = [2, 16], strides = [1, 1]} : vector<2x64xf32> to vector<2x16xf32>
    %154 = math.tanh %153 : vector<2x16xf32>
    %155 = vector.extract_strided_slice %152 {offsets = [0, 0], sizes = [2, 16], strides = [1, 1]} : vector<2x48xf32> to vector<2x16xf32>
    %156 = vector.extract_strided_slice %152 {offsets = [0, 16], sizes = [2, 16], strides = [1, 1]} : vector<2x48xf32> to vector<2x16xf32>
    %157 = vector.extract_strided_slice %152 {offsets = [0, 32], sizes = [2, 16], strides = [1, 1]} : vector<2x48xf32> to vector<2x16xf32>
    %158 = arith.mulf %156, %139 : vector<2x16xf32>
    %159 = arith.mulf %155, %154 : vector<2x16xf32>
    %160 = arith.addf %158, %159 : vector<2x16xf32>
    %161 = math.tanh %160 : vector<2x16xf32>
    %162 = arith.mulf %157, %161 : vector<2x16xf32>
    %163 = arith.mulf %162, %162 : vector<2x16xf32>
    %164 = arith.addf %143, %163 : vector<2x16xf32>
    %165 = vector.extract_strided_slice %14 {offsets = [14, 0], sizes = [2, 64], strides = [1, 1]} : vector<16x64xf32> to vector<2x64xf32>
    %cst_22 = arith.constant dense<0.000000e+00> : vector<2x64xf32>
    %166 = tpu.matmul %162, %1, %cst_22 {dimension_numbers = #tpu.dot_dimension_numbers<[1], [0], [0], [1], [0, 0, 1, 1], [], []>} : vector<2x16xf32>, vector<16x64xf32>, vector<2x64xf32> -> vector<2x64xf32>
    %167 = arith.addf %165, %166 : vector<2x64xf32>
    %168 = vector.extract_strided_slice %167 {offsets = [0, 0], sizes = [2, 48], strides = [1, 1]} : vector<2x64xf32> to vector<2x48xf32>
    %169 = arith.negf %168 : vector<2x48xf32>
    %170 = math.exp %169 : vector<2x48xf32>
    %cst_23 = arith.constant 1.000000e+00 : f32
    %171 = vector.broadcast %cst_23 : f32 to vector<2x48xf32>
    %172 = arith.addf %171, %170 : vector<2x48xf32>
    %173 = arith.divf %171, %172 : vector<2x48xf32>
    %174 = vector.extract_strided_slice %167 {offsets = [0, 48], sizes = [2, 16], strides = [1, 1]} : vector<2x64xf32> to vector<2x16xf32>
    %175 = math.tanh %174 : vector<2x16xf32>
    %176 = vector.extract_strided_slice %173 {offsets = [0, 0], sizes = [2, 16], strides = [1, 1]} : vector<2x48xf32> to vector<2x16xf32>
    %177 = vector.extract_strided_slice %173 {offsets = [0, 16], sizes = [2, 16], strides = [1, 1]} : vector<2x48xf32> to vector<2x16xf32>
    %178 = vector.extract_strided_slice %173 {offsets = [0, 32], sizes = [2, 16], strides = [1, 1]} : vector<2x48xf32> to vector<2x16xf32>
    %179 = arith.mulf %177, %160 : vector<2x16xf32>
    %180 = arith.mulf %176, %175 : vector<2x16xf32>
    %181 = arith.addf %179, %180 : vector<2x16xf32>
    %182 = math.tanh %181 : vector<2x16xf32>
    %183 = arith.mulf %178, %182 : vector<2x16xf32>
    %184 = arith.mulf %183, %183 : vector<2x16xf32>
    %185 = arith.addf %164, %184 : vector<2x16xf32>
    %186 = tpu.concatenate %36, %57, %78, %99, %120, %141, %162, %183 in 0 : vector<2x16xf32>, vector<2x16xf32>, vector<2x16xf32>, vector<2x16xf32>, vector<2x16xf32>, vector<2x16xf32>, vector<2x16xf32>, vector<2x16xf32> -> vector<16x16xf32>
    %cst_24 = arith.constant dense<0.000000e+00> : vector<16x12xf32>
    %187 = tpu.matmul %186, %5, %cst_24 {dimension_numbers = #tpu.dot_dimension_numbers<[1], [0], [0], [1], [0, 0, 1, 1], [], []>} : vector<16x16xf32>, vector<16x12xf32>, vector<16x12xf32> -> vector<16x12xf32>
    %188 = vector.broadcast %8 : vector<1x12xf32> to vector<16x12xf32>
    %189 = arith.addf %187, %188 : vector<16x12xf32>
    %cst_25 = arith.constant dense<0.000000e+00> : vector<16x12xf32>
    %190 = tpu.matmul %186, %6, %cst_25 {dimension_numbers = #tpu.dot_dimension_numbers<[1], [0], [0], [1], [0, 0, 1, 1], [], []>} : vector<16x16xf32>, vector<16x12xf32>, vector<16x12xf32> -> vector<16x12xf32>
    %cst_26 = arith.constant dense<0.000000e+00> : vector<16x12xf32>
    %191 = tpu.matmul %186, %7, %cst_26 {dimension_numbers = #tpu.dot_dimension_numbers<[1], [0], [0], [1], [0, 0, 1, 1], [], []>} : vector<16x16xf32>, vector<16x12xf32>, vector<16x12xf32> -> vector<16x12xf32>
    %cst_27 = arith.constant 0.000000e+00 : f32
    %192 = vector.broadcast %cst_27 : f32 to vector<2x12xf32>
    %193 = vector.extract_strided_slice %190 {offsets = [0, 0], sizes = [2, 12], strides = [1, 1]} : vector<16x12xf32> to vector<2x12xf32>
    %194 = vector.broadcast %9 : vector<1x12xf32> to vector<2x12xf32>
    %195 = arith.addf %194, %193 : vector<2x12xf32>
    %196 = vector.extract_strided_slice %191 {offsets = [2, 0], sizes = [2, 12], strides = [1, 1]} : vector<16x12xf32> to vector<2x12xf32>
    %197 = arith.addf %195, %196 : vector<2x12xf32>
    %198 = vector.extract_strided_slice %189 {offsets = [0, 0], sizes = [2, 12], strides = [1, 1]} : vector<16x12xf32> to vector<2x12xf32>
    %199 = arith.mulf %198, %197 : vector<2x12xf32>
    %200 = arith.addf %192, %199 : vector<2x12xf32>
    %201 = vector.extract_strided_slice %190 {offsets = [4, 0], sizes = [2, 12], strides = [1, 1]} : vector<16x12xf32> to vector<2x12xf32>
    %202 = vector.broadcast %9 : vector<1x12xf32> to vector<2x12xf32>
    %203 = arith.addf %202, %201 : vector<2x12xf32>
    %204 = vector.extract_strided_slice %191 {offsets = [6, 0], sizes = [2, 12], strides = [1, 1]} : vector<16x12xf32> to vector<2x12xf32>
    %205 = arith.addf %203, %204 : vector<2x12xf32>
    %206 = vector.extract_strided_slice %189 {offsets = [4, 0], sizes = [2, 12], strides = [1, 1]} : vector<16x12xf32> to vector<2x12xf32>
    %207 = arith.mulf %206, %205 : vector<2x12xf32>
    %208 = arith.addf %200, %207 : vector<2x12xf32>
    %209 = vector.extract_strided_slice %190 {offsets = [8, 0], sizes = [2, 12], strides = [1, 1]} : vector<16x12xf32> to vector<2x12xf32>
    %210 = vector.broadcast %9 : vector<1x12xf32> to vector<2x12xf32>
    %211 = arith.addf %210, %209 : vector<2x12xf32>
    %212 = vector.extract_strided_slice %191 {offsets = [10, 0], sizes = [2, 12], strides = [1, 1]} : vector<16x12xf32> to vector<2x12xf32>
    %213 = arith.addf %211, %212 : vector<2x12xf32>
    %214 = vector.extract_strided_slice %189 {offsets = [8, 0], sizes = [2, 12], strides = [1, 1]} : vector<16x12xf32> to vector<2x12xf32>
    %215 = arith.mulf %214, %213 : vector<2x12xf32>
    %216 = arith.addf %208, %215 : vector<2x12xf32>
    %217 = vector.extract_strided_slice %190 {offsets = [12, 0], sizes = [2, 12], strides = [1, 1]} : vector<16x12xf32> to vector<2x12xf32>
    %218 = vector.broadcast %9 : vector<1x12xf32> to vector<2x12xf32>
    %219 = arith.addf %218, %217 : vector<2x12xf32>
    %220 = vector.extract_strided_slice %191 {offsets = [14, 0], sizes = [2, 12], strides = [1, 1]} : vector<16x12xf32> to vector<2x12xf32>
    %221 = arith.addf %219, %220 : vector<2x12xf32>
    %222 = vector.extract_strided_slice %189 {offsets = [12, 0], sizes = [2, 12], strides = [1, 1]} : vector<16x12xf32> to vector<2x12xf32>
    %223 = arith.mulf %222, %221 : vector<2x12xf32>
    %224 = arith.addf %216, %223 : vector<2x12xf32>
    %225 = vector.broadcast %10 : vector<1x12xf32> to vector<2x12xf32>
    %226 = arith.mulf %224, %225 : vector<2x12xf32>
    %227 = vector.extract_strided_slice %226 {offsets = [0, 0], sizes = [2, 3], strides = [1, 1]} : vector<2x12xf32> to vector<2x3xf32>
    %228 = vector.extract_strided_slice %226 {offsets = [0, 3], sizes = [2, 3], strides = [1, 1]} : vector<2x12xf32> to vector<2x3xf32>
    %229 = arith.addf %227, %228 : vector<2x3xf32>
    %230 = vector.extract_strided_slice %226 {offsets = [0, 6], sizes = [2, 3], strides = [1, 1]} : vector<2x12xf32> to vector<2x3xf32>
    %231 = arith.addf %229, %230 : vector<2x3xf32>
    %232 = vector.extract_strided_slice %226 {offsets = [0, 9], sizes = [2, 3], strides = [1, 1]} : vector<2x12xf32> to vector<2x3xf32>
    %233 = arith.addf %231, %232 : vector<2x3xf32>
    %cst_28 = arith.constant dense<0.000000e+00> : vector<2xf32>
    %234 = vector.multi_reduction <add>, %185, %cst_28 [1] : vector<2x16xf32> to vector<2xf32>
    %235 = vector.shape_cast %234 : vector<2xf32> to vector<2x1xf32>
    %236 = math.sqrt %235 : vector<2x1xf32>
    %cst_29 = arith.constant dense<0.000000e+00> : vector<1xf32>
    %237 = vector.multi_reduction <add>, %236, %cst_29 [0] : vector<2x1xf32> to vector<1xf32>
    %238 = vector.shape_cast %237 : vector<1xf32> to vector<1x1xf32>
    %cst_30 = arith.constant 5.000000e-01 : f32
    %239 = vector.broadcast %cst_30 : f32 to vector<1x1xf32>
    %240 = arith.mulf %238, %239 : vector<1x1xf32>
    %cst_31 = arith.constant 0.000000e+00 : f32
    %241 = vector.broadcast %cst_31 : f32 to vector<2x1xf32>
    %242 = vector.broadcast %240 : vector<1x1xf32> to vector<2x1xf32>
    %243 = arith.addf %241, %242 : vector<2x1xf32>
    %244 = tpu.concatenate %233, %243 in 1 : vector<2x3xf32>, vector<2x1xf32> -> vector<2x4xf32>
    %c0_32 = arith.constant 0 : index
    %c0_33 = arith.constant 0 : index
    %245 = vector.load %arg3[%c0_32, %c0_33] : memref<2x4xf32, #tpu.memory_space<vmem>>, vector<2x4xf32>
    tpu.vector_store %arg3[%c0_32, %c0_33], %244 {strides = array<i32>} : memref<2x4xf32, #tpu.memory_space<vmem>>, vector<2x4xf32>,
    return
  }
}

</mosaic_0001>

<bundles_post_ra>
// kernel: tpfn_fused_forward.1
= control target key start
LH: loop header
LB: loop body
LE: loop exit
PB: predicated region body
PF: predicated region fallthrough
CT: control target
= control target key end

     0   :  { %v1596_v3 = vmov 0.0|0.0   ;;  %vm34_vm0 = vcmask 293888   ;;  %vm1597_vm1 = vmmov 0   ;;  %v1598_v8 = vmov 0.0   ;;  %s1601_s30 = smov 96   ;;  %s1603_s18 = smov 122   ;;  %s1802_s1 = inlined_call_operand.vmem [shape: f32[53,64], index: 1, kind: input, shape index: {}]   ;;  %s1803_s0 = inlined_call_operand.vmem [shape: f32[16,36], index: 0, kind: input, shape index: {}]   ;;  %s1804_s2 = inlined_call_operand.vmem [shape: f32[51,12], index: 2, kind: input, shape index: {}]   ;;  %s1805_s3 = inlined_call_operand.vmem [shape: f32[2,4], index: 3, kind: output, shape index: {}]  }
   0x1   :  { %v14_v0 = vld [vmem:[%s1802_s1] sm:$0xff]  ;;  %v15_v1 = vld [vmem:[%s1802_s1 + $0x8] sm:$0xff]  ;;  %v16_v2 = vld [vmem:[%s1802_s1 + $0x10] sm:$0xff]  ;;  %1485 = vmatprep.subr.bf16.mxu1 %v1596_v3  ;;  %1404 = vmatprep.mubr.msk.f32.mxu1 %vm1597_vm1, %v1598_v8  ;;  %vm41_vm2 = vcmask 1043456   ;;  %v30_v14 = vlaneseq  ;;  %vm120_vm3 = vcmask 130048   ;;  %vm997_vm4 = vcmask 1041408  }
   0x2   :  { %v17_v4 = vld [vmem:[%s1802_s1 + $0x18] sm:$0xff]  ;;  %v1638_v5 = vpack.c.bf16 %v15_v1, %v14_v0  ;;  %v18_v6 = vld [vmem:[%s1802_s1 + $0x20] sm:$0xff]  ;;  %v19_v7 = vld [vmem:[%s1802_s1 + $0x28] sm:$0xff]  ;;  %vm1000_vm5 = vcmask 1045504   ;;  %vm1292_vm6 = vcmask 123904   ;;  %s1604_s19 = smov 119  }
   0x3   :  { %v1477_v9 = vpack.c.bf16 %v17_v4, %v16_v2  ;;  %v1481_v10 = vpack.c.bf16 %v19_v7, %v18_v6  ;;  %v28_v11 = vld [vmem:[%s1803_s0] sm:$0xff]  ;;  %v20_v12 = vld [vmem:[%s1802_s1 + $0x30] sm:$0x1f]  ;;  %v29_v13 = vld [vmem:[%s1803_s0 + $0x8] sm:$0xff]  ;;  %v1673_v15 = vshrl.u32 %v30_v14, 7  ;;  %s1599_s0 = smov 80  }
   0x4   :  { %1397 = vmatprep.mubr.msk.f32.mxu0 %vm34_vm0, %v28_v11  ;;  %1487 = vmatpush3.bf16.msra.mxu1 %v1638_v5  ;;  %s1600_s1 = smov 16   ;;  %vm1312_vm9 = vcmask 23552   ;;  %vm1314_vm10 = vcmask 25600  }
   0x5   :  { %1478 = vmatprep.subr.bf16.mxu0 %v1477_v9  ;;  %1488 = vmatprep.subr.bf16.mxu1 %v1596_v3  ;;  %v32_v17 = vsub.s32 4, %v1673_v15 }
   0x6   :  { %1480 = vmatpush3.bf16.msra.mxu0 %v1477_v9 }
   0x7   :  { %1482 = vmatprep.subr.bf16.mxu0 %v1481_v10  ;;  %1405 = vmatmul.mubr.f32.vlgmr.msra.gmra.mrb[0].mxu1 %v1598_v8  ;;  %v33_v19 = vrot.slane %v20_v12, %v32_v17 }
   0x8   :  { %1490 = vmatpush3.bf16.msra.mxu1 %v1638_v5  ;;  %1411 = vmatprep.mubr.msk.f32.mxu1 %vm1597_vm1, %v1598_v8 }
   0x9   :  { %1491 = vmatprep.subr.bf16.mxu1 %v1596_v3 }
   0xa   :  { %1484 = vmatpush3.bf16.msra.mxu0 %v1481_v10 }
   0xb   :  { %1395 = vmatprep.subr.msk.mxu0 %vm41_vm2, %v20_v12 }
   0xe   :  { %1396 = vmatpush3.msk.msra.mxu0 %vm41_vm2, %v20_v12 }
   0xf   :  { %1398 = vmatmul.mubr.msk.f32.vlgmr.msra.gmra.mrb[0].mxu0 %vm34_vm0, %v29_v13  ;;  %1494 = vmatprep.subr.bf16.mxu0 %v1596_v3 }
  0x10   :  { %1496 = vmatpush3.bf16.msra.mxu0 %v1638_v5  ;;  %1425 = vmatprep.mubr.msk.f32.mxu0 %vm1597_vm1, %v1598_v8 }
  0x11   :  { %1500 = vmatprep.subr.bf16.mxu0 %v1596_v3 }
  0xda   :  { %v190_v16 = vpop.f32.mrb[0].mxu1 }
  0xdb   :  { %v1406_v18 = vpop.f32.mrb[1].mxu1 }
  0xe2   :  { %v1399_v20 = vpop.f32.mrb[0].mxu0 }
  0xe3   :  { %v1676_v21 = vadd.f32 %v1399_v20, %v33_v19  ;;  %v111_v22 = vpop.f32.mrb[1].mxu0 }
  0xe4   :  { %v1678_v23 = vadd.f32 %v111_v22, %v33_v19 }
  0xe6   :  { %v194_v24 = vadd.f32 %v190_v16, %v1678_v23 }
  0xe8   :  { %1530 = vtanh.f32 %v194_v24  ;;  %v1323_v26 = vmul.f32 -1.442695, %v194_v24 }
  0xea   :  { %1532 = vpow2.f32 %v1323_v26 }
  0xf2   :  { %v1531_v25 = vpop.eup %1530 }
  0xf3   :  { %204 = vrot.lane.b32.xlu0 %v1531_v25, %s1599_s0 }
  0xf4   :  { %v1533_v27 = vpop.eup %1532 }
  0xf5   :  { %v198_v28 = vadd.f32 1.0, %v1533_v27 }
  0xf7   :  { %1534 = vrcp.f32 %v198_v28 }
 0x101   :  { %v1535_v29 = vpop.eup %1534 }
 0x102   :  { %v202_v32 = vmul.f32 0.0, %v1535_v29 }
 0x165   :  { %v205_v30 = vpop.permute.xlu0 %204 }
 0x166   :  { %v207_v31 = vmul.f32 %v1535_v29, %v205_v30 }
 0x168   :  { %209 = vrot.lane.b32.xlu0 %v207_v31, %s1600_s1 }
 0x1da   :  { %v210_v33 = vpop.permute.xlu0 %209 }
 0x1db   :  { %v212_v34 = vadd.f32 %v210_v33, %v202_v32 }
 0x1dd   :  { %1536 = vtanh.f32 %v212_v34  ;;  %v308_v50 = vrot.slane %v212_v34, 6 }
 0x1e7   :  { %v1537_v35 = vpop.eup %1536 }
 0x1e8   :  { %215 = vrot.lane.b32.xlu1 %v1537_v35, %s1600_s1 }
 0x25a   :  { %v216_v36 = vpop.permute.xlu1 %215 }
 0x25b   :  { %v1684_v37 = vmul.f32 %v1535_v29, %v216_v36 }
 0x25d   :  { %222 = vrot.lane.b32.xlu1 %v1684_v37, %s1601_s30  ;;  %v219_v20 = vmul.f32 %v1684_v37, %v1684_v37 }
 0x2cf   :  { %v223_v38 = vpop.permute.xlu1 %222 }
 0x2d0   :  { %1412 = vmatmul.mubr.msk.f32.vlgmr.msra.gmra.mrb[2].mxu1 %vm120_vm3, %v223_v38 }
 0x2d1   :  { %1493 = vmatpush3.bf16.msra.mxu1 %v1638_v5  ;;  %1418 = vmatprep.mubr.msk.f32.mxu1 %vm1597_vm1, %v1598_v8 }
 0x2d2   :  { %1497 = vmatprep.subr.bf16.mxu1 %v1596_v3 }
 0x3a3   :  { %v292_v39 = vpop.f32.mrb[2].mxu1 }
 0x3a4   :  { %v297_v40 = vrot.slane %v292_v39, 6  ;;  %v1413_v41 = vpop.f32.mrb[3].mxu1 }
 0x3a6   :  { %v299_v42 = vadd.f32 %v297_v40, %v1678_v23 }
 0x3a8   :  { %1538 = vtanh.f32 %v299_v42  ;;  %v1325_v44 = vmul.f32 -1.442695, %v299_v42 }
 0x3aa   :  { %1540 = vpow2.f32 %v1325_v44 }
 0x3b2   :  { %v1539_v43 = vpop.eup %1538 }
 0x3b3   :  { %312 = vrot.lane.b32.xlu0 %v1539_v43, %s1599_s0 }
 0x3b4   :  { %v1541_v45 = vpop.eup %1540 }
 0x3b5   :  { %v303_v46 = vadd.f32 1.0, %v1541_v45 }
 0x3b7   :  { %1542 = vrcp.f32 %v303_v46 }
 0x3c1   :  { %v1543_v47 = vpop.eup %1542 }
 0x3c2   :  { %v310_v51 = vmul.f32 %v1543_v47, %v308_v50 }
 0x425   :  { %v313_v48 = vpop.permute.xlu0 %312 }
 0x426   :  { %v315_v49 = vmul.f32 %v1543_v47, %v313_v48 }
 0x428   :  { %317 = vrot.lane.b32.xlu1 %v315_v49, %s1600_s1 }
 0x49a   :  { %v318_v52 = vpop.permute.xlu1 %317 }
 0x49b   :  { %v320_v53 = vadd.f32 %v318_v52, %v310_v51 }
 0x49d   :  { %1544 = vtanh.f32 %v320_v53  ;;  %v420_v9 = vrot.slane %v320_v53, 6 }
 0x4a7   :  { %v1545_v54 = vpop.eup %1544 }
 0x4a8   :  { %323 = vrot.lane.b32.xlu0 %v1545_v54, %s1600_s1 }
 0x51a   :  { %v324_v55 = vpop.permute.xlu0 %323 }
 0x51b   :  { %v326_v56 = vmul.f32 %v1543_v47, %v324_v55 }
 0x51d   :  { %v333_v57 = vrot.slane %v326_v56, 2  ;;  %v327_v14 = vmul.f32 %v326_v56, %v326_v56  ;;  %v998_v19 = vsel %vm997_vm4, %v1684_v37, %v326_v56 }
 0x51f   :  { %334 = vrot.lane.b32.xlu1 %v333_v57, %s1601_s30  ;;  %v329_v17 = vrot.slane %v327_v14, 2 }
 0x521   :  { %v331_v26 = vadd.f32 %v329_v17, %v219_v20 }
 0x591   :  { %v335_v58 = vpop.permute.xlu1 %334 }
 0x592   :  { %1419 = vmatmul.mubr.msk.f32.vlgmr.msra.gmra.mrb[4].mxu1 %vm120_vm3, %v335_v58 }
 0x593   :  { %1499 = vmatpush3.bf16.msra.mxu1 %v1638_v5  ;;  %1432 = vmatprep.mubr.msk.f32.mxu1 %vm1597_vm1, %v1598_v8 }
 0x594   :  { %1503 = vmatprep.subr.bf16.mxu1 %v1596_v3 }
 0x665   :  { %v404_v59 = vpop.f32.mrb[4].mxu1 }
 0x666   :  { %v409_v60 = vrot.slane %v404_v59, 4  ;;  %v1420_v61 = vpop.f32.mrb[5].mxu1 }
 0x668   :  { %v411_v62 = vadd.f32 %v409_v60, %v1678_v23 }
 0x66a   :  { %1546 = vtanh.f32 %v411_v62  ;;  %v1327_v0 = vmul.f32 -1.442695, %v411_v62 }
 0x66c   :  { %1548 = vpow2.f32 %v1327_v0 }
 0x674   :  { %v1547_v63 = vpop.eup %1546 }
 0x675   :  { %424 = vrot.lane.b32.xlu0 %v1547_v63, %s1599_s0 }
 0x676   :  { %v1549_v1 = vpop.eup %1548 }
 0x677   :  { %v415_v2 = vadd.f32 1.0, %v1549_v1 }
 0x679   :  { %1550 = vrcp.f32 %v415_v2 }
 0x683   :  { %v1551_v4 = vpop.eup %1550 }
 0x684   :  { %v422_v10 = vmul.f32 %v1551_v4, %v420_v9 }
 0x6e7   :  { %v425_v6 = vpop.permute.xlu0 %424 }
 0x6e8   :  { %v427_v7 = vmul.f32 %v1551_v4, %v425_v6 }
 0x6ea   :  { %429 = vrot.lane.b32.xlu1 %v427_v7, %s1600_s1 }
 0x75c   :  { %v430_v11 = vpop.permute.xlu1 %429 }
 0x75d   :  { %v432_v12 = vadd.f32 %v430_v11, %v422_v10 }
 0x75f   :  { %1552 = vtanh.f32 %v432_v12 }
 0x769   :  { %v1553_v13 = vpop.eup %1552 }
 0x76a   :  { %435 = vrot.lane.b32.xlu0 %v1553_v13, %s1600_s1 }
 0x7dc   :  { %v436_v16 = vpop.permute.xlu0 %435 }
 0x7dd   :  { %v438_v18 = vmul.f32 %v1551_v4, %v436_v16 }
 0x7df   :  { %v439_v22 = vmul.f32 %v438_v18, %v438_v18  ;;  %v445_v24 = vrot.slane %v438_v18, 4  ;;  %v999_v25 = vsel %vm41_vm2, %v998_v19, %v438_v18 }
 0x7e1   :  { %v441_v27 = vrot.slane %v439_v22, 4  ;;  %446 = vrot.lane.b32.xlu1 %v445_v24, %s1601_s30 }
 0x7e3   :  { %v443_v28 = vadd.f32 %v441_v27, %v331_v26 }
 0x853   :  { %v447_v29 = vpop.permute.xlu1 %446 }
 0x854   :  { %1426 = vmatmul.mubr.msk.f32.vlgmr.msra.gmra.mrb[2].mxu0 %vm120_vm3, %v447_v29 }
 0x855   :  { %1502 = vmatpush3.bf16.msra.mxu0 %v1638_v5  ;;  %1439 = vmatprep.mubr.msk.f32.mxu0 %vm1597_vm1, %v1598_v8 }
 0x856   :  { %1506 = vmatprep.subr.bf16.mxu0 %v1596_v3  ;;  %v532_v3 = vrot.slane %v432_v12, 6 }
 0x927   :  { %v516_v30 = vpop.f32.mrb[2].mxu0 }
 0x928   :  { %v521_v31 = vrot.slane %v516_v30, 2  ;;  %v1427_v32 = vpop.f32.mrb[3].mxu0 }
 0x92a   :  { %v523_v33 = vadd.f32 %v521_v31, %v1678_v23 }
 0x92c   :  { %1554 = vtanh.f32 %v523_v33  ;;  %v1329_v35 = vmul.f32 -1.442695, %v523_v33 }
 0x92e   :  { %1556 = vpow2.f32 %v1329_v35 }
 0x936   :  { %v1555_v34 = vpop.eup %1554 }
 0x937   :  { %536 = vrot.lane.b32.xlu0 %v1555_v34, %s1599_s0 }
 0x938   :  { %v1557_v36 = vpop.eup %1556 }
 0x939   :  { %v527_v37 = vadd.f32 1.0, %v1557_v36 }
 0x93b   :  { %1558 = vrcp.f32 %v527_v37 }
 0x945   :  { %v1559_v38 = vpop.eup %1558 }
 0x946   :  { %v534_v41 = vmul.f32 %v1559_v38, %v532_v3 }
 0x9a9   :  { %v537_v39 = vpop.permute.xlu0 %536 }
 0x9aa   :  { %v539_v40 = vmul.f32 %v1559_v38, %v537_v39 }
 0x9ac   :  { %541 = vrot.lane.b32.xlu1 %v539_v40, %s1600_s1 }
 0xa1e   :  { %v542_v42 = vpop.permute.xlu1 %541 }
 0xa1f   :  { %v544_v43 = vadd.f32 %v542_v42, %v534_v41 }
 0xa21   :  { %1560 = vtanh.f32 %v544_v43  ;;  %v641_v62 = vrot.slane %v544_v43, 6 }
 0xa2b   :  { %v1561_v23 = vpop.eup %1560 }
 0xa2c   :  { %547 = vrot.lane.b32.xlu0 %v1561_v23, %s1600_s1 }
 0xa9e   :  { %v548_v44 = vpop.permute.xlu0 %547 }
 0xa9f   :  { %v550_v45 = vmul.f32 %v1559_v38, %v548_v44 }
 0xaa1   :  { %v551_v46 = vmul.f32 %v550_v45, %v550_v45  ;;  %v557_v47 = vrot.slane %v550_v45, 6  ;;  %v1723_v48 = vsel %vm1000_vm5, %v999_v25, %v550_v45 }
 0xaa3   :  { %v553_v49 = vrot.slane %v551_v46, 6  ;;  %558 = vrot.lane.b32.xlu1 %v557_v47, %s1601_s30 }
 0xaa5   :  { %v555_v50 = vadd.f32 %v553_v49, %v443_v28 }
 0xb15   :  { %v559_v51 = vpop.permute.xlu1 %558 }
 0xb16   :  { %1433 = vmatmul.mubr.msk.f32.vlgmr.msra.gmra.mrb[6].mxu1 %vm120_vm3, %v559_v51 }
 0xb17   :  { %1505 = vmatpush3.bf16.msra.mxu1 %v1638_v5  ;;  %1446 = vmatprep.mubr.msk.f32.mxu1 %vm1597_vm1, %v1598_v8 }
 0xbe9   :  { %v628_v52 = vpop.f32.mrb[6].mxu1 }
 0xbea   :  { %v632_v53 = vadd.f32 %v628_v52, %v1676_v21  ;;  %v1434_v54 = vpop.f32.mrb[7].mxu1 }
 0xbec   :  { %1562 = vtanh.f32 %v632_v53  ;;  %v1331_v56 = vmul.f32 -1.442695, %v632_v53 }
 0xbee   :  { %1564 = vpow2.f32 %v1331_v56 }
 0xbf6   :  { %v1563_v55 = vpop.eup %1562 }
 0xbf7   :  { %645 = vrot.lane.b32.xlu0 %v1563_v55, %s1599_s0 }
 0xbf8   :  { %v1565_v57 = vpop.eup %1564 }
 0xbf9   :  { %v636_v58 = vadd.f32 1.0, %v1565_v57 }
 0xbfb   :  { %1566 = vrcp.f32 %v636_v58 }
 0xc05   :  { %v1567_v59 = vpop.eup %1566 }
 0xc06   :  { %v643_v63 = vmul.f32 %v1567_v59, %v641_v62 }
 0xc69   :  { %v646_v60 = vpop.permute.xlu0 %645 }
 0xc6a   :  { %v648_v61 = vmul.f32 %v1567_v59, %v646_v60 }
 0xc6c   :  { %650 = vrot.lane.b32.xlu1 %v648_v61, %s1600_s1 }
 0xcde   :  { %v651_v0 = vpop.permute.xlu1 %650 }
 0xcdf   :  { %v653_v1 = vadd.f32 %v651_v0, %v643_v63 }
 0xce1   :  { %1568 = vtanh.f32 %v653_v1 }
 0xceb   :  { %v1569_v2 = vpop.eup %1568 }
 0xcec   :  { %656 = vrot.lane.b32.xlu0 %v1569_v2, %s1600_s1 }
 0xd5e   :  { %v657_v4 = vpop.permute.xlu0 %656 }
 0xd5f   :  { %v1734_v6 = vmul.f32 %v1567_v59, %v657_v4 }
 0xd61   :  { %663 = vrot.lane.b32.xlu1 %v1734_v6, %s1601_s30  ;;  %v660_v27 = vmul.f32 %v1734_v6, %v1734_v6 }
 0xd63   :  { %v661_v31 = vadd.f32 %v660_v27, %v555_v50 }
 0xdd3   :  { %v664_v7 = vpop.permute.xlu1 %663 }
 0xdd4   :  { %1440 = vmatmul.mubr.msk.f32.vlgmr.msra.gmra.mrb[4].mxu0 %vm120_vm3, %v664_v7 }
 0xdd5   :  { %1508 = vmatpush3.bf16.msra.mxu0 %v1638_v5  ;;  %1453 = vmatprep.mubr.msk.f32.mxu0 %vm1597_vm1, %v1598_v8  ;;  %v749_v8 = vrot.slane %v653_v1, 6 }
 0xea7   :  { %v733_v9 = vpop.f32.mrb[4].mxu0 }
 0xea8   :  { %v738_v10 = vrot.slane %v733_v9, 6  ;;  %v1441_v11 = vpop.f32.mrb[5].mxu0 }
 0xeaa   :  { %v740_v12 = vadd.f32 %v738_v10, %v1676_v21 }
 0xeac   :  { %1570 = vtanh.f32 %v740_v12  ;;  %v1333_v14 = vmul.f32 -1.442695, %v740_v12 }
 0xeae   :  { %1572 = vpow2.f32 %v1333_v14  ;;  %v22_v14 = vld [vmem:[%s1804_s2 + $0x8] sm:$0xff] }
 0xeb6   :  { %v1571_v13 = vpop.eup %1570 }
 0xeb7   :  { %753 = vrot.lane.b32.xlu0 %v1571_v13, %s1599_s0  ;;  %v21_v13 = vld [vmem:[%s1804_s2] sm:$0xff] }
 0xeb8   :  { %v1573_v16 = vpop.eup %1572 }
 0xeb9   :  { %v744_v17 = vadd.f32 1.0, %v1573_v16  ;;  %v1509_v16 = vpack.c.bf16 %v22_v14, %v21_v13 }
 0xebb   :  { %1574 = vrcp.f32 %v744_v17  ;;  %v24_v17 = vld [vmem:[%s1804_s2 + $0x18] sm:$0xff]  ;;  %1510 = vmatprep.subr.bf16.mxu1 %v1509_v16 }
 0xec5   :  { %v1575_v18 = vpop.eup %1574 }
 0xec6   :  { %v751_v20 = vmul.f32 %v1575_v18, %v749_v8 }
 0xf29   :  { %v754_v19 = vpop.permute.xlu0 %753 }
 0xf2a   :  { %v756_v5 = vmul.f32 %v1575_v18, %v754_v19  ;;  %v26_v19 = vld [vmem:[%s1804_s2 + $0x28] sm:$0xff] }
 0xf2c   :  { %758 = vrot.lane.b32.xlu1 %v756_v5, %s1600_s1 }
 0xf9e   :  { %v759_v22 = vpop.permute.xlu1 %758 }
 0xf9f   :  { %v761_v24 = vadd.f32 %v759_v22, %v751_v20 }
 0xfa1   :  { %1576 = vtanh.f32 %v761_v24  ;;  %v861_v44 = vrot.slane %v761_v24, 6 }
 0xfab   :  { %v1577_v25 = vpop.eup %1576 }
 0xfac   :  { %764 = vrot.lane.b32.xlu0 %v1577_v25, %s1600_s1 }
0x101e   :  { %v765_v26 = vpop.permute.xlu0 %764 }
0x101f   :  { %v767_v28 = vmul.f32 %v1575_v18, %v765_v26  ;;  %v25_v18 = vld [vmem:[%s1804_s2 + $0x20] sm:$0xff] }
0x1020   :  { %v1517_v8 = vpack.c.bf16 %v26_v19, %v25_v18 }
0x1021   :  { %v768_v29 = vmul.f32 %v767_v28, %v767_v28  ;;  %v774_v30 = vrot.slane %v767_v28, 2  ;;  %v1002_v52 = vsel %vm997_vm4, %v1734_v6, %v767_v28 }
0x1023   :  { %v770_v32 = vrot.slane %v768_v29, 2  ;;  %775 = vrot.lane.b32.xlu1 %v774_v30, %s1601_s30 }
0x1025   :  { %v772_v33 = vadd.f32 %v770_v32, %v661_v31  ;;  %v1246_v32 = vsub.s32 1, %v1673_v15 }
0x1095   :  { %v776_v34 = vpop.permute.xlu1 %775 }
0x1096   :  { %1447 = vmatmul.mubr.msk.f32.vlgmr.msra.gmra.mrb[8].mxu1 %vm120_vm3, %v776_v34  ;;  %v1007_v34 = vsub.s32 0, %v1673_v15 }
0x1097   :  { %1512 = vmatpush3.bf16.msra.mxu1 %v1509_v16 }
0x1098   :  { %1518 = vmatprep.subr.bf16.mxu1 %v1517_v8 }
0x1169   :  { %v845_v35 = vpop.f32.mrb[8].mxu1 }
0x116a   :  { %v850_v36 = vrot.slane %v845_v35, 4  ;;  %v1448_v37 = vpop.f32.mrb[9].mxu1 }
0x116c   :  { %v852_v38 = vadd.f32 %v850_v36, %v1676_v21 }
0x116e   :  { %1578 = vtanh.f32 %v852_v38  ;;  %v1335_v40 = vmul.f32 -1.442695, %v852_v38 }
0x1170   :  { %1580 = vpow2.f32 %v1335_v40 }
0x1178   :  { %v1579_v39 = vpop.eup %1578 }
0x1179   :  { %865 = vrot.lane.b32.xlu0 %v1579_v39, %s1599_s0 }
0x117a   :  { %v1581_v3 = vpop.eup %1580 }
0x117b   :  { %v856_v41 = vadd.f32 1.0, %v1581_v3 }
0x117d   :  { %1582 = vrcp.f32 %v856_v41 }
0x1187   :  { %v1583_v42 = vpop.eup %1582 }
0x1188   :  { %v863_v45 = vmul.f32 %v1583_v42, %v861_v44 }
0x11eb   :  { %v866_v43 = vpop.permute.xlu0 %865 }
0x11ec   :  { %v868_v23 = vmul.f32 %v1583_v42, %v866_v43 }
0x11ee   :  { %870 = vrot.lane.b32.xlu1 %v868_v23, %s1600_s1 }
0x1260   :  { %v871_v46 = vpop.permute.xlu1 %870 }
0x1261   :  { %v873_v47 = vadd.f32 %v871_v46, %v863_v45 }
0x1263   :  { %1584 = vtanh.f32 %v873_v47  ;;  %v973_v9 = vrot.slane %v873_v47, 6 }
0x126d   :  { %v1585_v49 = vpop.eup %1584 }
0x126e   :  { %876 = vrot.lane.b32.xlu0 %v1585_v49, %s1600_s1 }
0x12e0   :  { %v877_v50 = vpop.permute.xlu0 %876 }
0x12e1   :  { %v879_v51 = vmul.f32 %v1583_v42, %v877_v50 }
0x12e3   :  { %v880_v53 = vmul.f32 %v879_v51, %v879_v51  ;;  %v886_v54 = vrot.slane %v879_v51, 4  ;;  %v1003_v55 = vsel %vm41_vm2, %v1002_v52, %v879_v51  ;;  %v1272_v52 = vsub.s32 2, %v1673_v15 }
0x12e5   :  { %v882_v56 = vrot.slane %v880_v53, 4  ;;  %887 = vrot.lane.b32.xlu1 %v886_v54, %s1601_s30 }
0x12e7   :  { %v884_v57 = vadd.f32 %v882_v56, %v772_v33  ;;  %v27_v33 = vld [vmem:[%s1804_s2 + $0x30] sm:$0x7] }
0x12e8   :  { %v1247_v37 = vrot.slane %v27_v33, %v1246_v32  ;;  %v1008_v40 = vrot.slane %v27_v33, %v1007_v34 }
0x1357   :  { %v888_v58 = vpop.permute.xlu1 %887 }
0x1358   :  { %1454 = vmatmul.mubr.msk.f32.vlgmr.msra.gmra.mrb[6].mxu0 %vm120_vm3, %v888_v58 }
0x142b   :  { %v957_v59 = vpop.f32.mrb[6].mxu0 }
0x142c   :  { %v962_v60 = vrot.slane %v957_v59, 2  ;;  %v1455_v61 = vpop.f32.mrb[7].mxu0 }
0x142e   :  { %v964_v62 = vadd.f32 %v962_v60, %v1676_v21 }
0x1430   :  { %1586 = vtanh.f32 %v964_v62  ;;  %v1337_v0 = vmul.f32 -1.442695, %v964_v62 }
0x1432   :  { %1588 = vpow2.f32 %v1337_v0 }
0x143a   :  { %v1587_v63 = vpop.eup %1586 }
0x143b   :  { %977 = vrot.lane.b32.xlu0 %v1587_v63, %s1599_s0 }
0x143c   :  { %v1589_v1 = vpop.eup %1588 }
0x143d   :  { %v968_v2 = vadd.f32 1.0, %v1589_v1 }
0x143f   :  { %1590 = vrcp.f32 %v968_v2 }
0x1449   :  { %v1591_v4 = vpop.eup %1590 }
0x144a   :  { %v975_v10 = vmul.f32 %v1591_v4, %v973_v9 }
0x14ad   :  { %v978_v6 = vpop.permute.xlu0 %977 }
0x14ae   :  { %v980_v7 = vmul.f32 %v1591_v4, %v978_v6 }
0x14b0   :  { %982 = vrot.lane.b32.xlu1 %v980_v7, %s1600_s1 }
0x14b4   :  { %1011 = vrot.lane.b32.xlu1 %v1723_v48, %s1601_s30  ;;  %v23_v48 = vld [vmem:[%s1804_s2 + $0x10] sm:$0xff]  ;;  %s1602_s2 = smov 125  }
0x14b5   :  { %v1513_v5 = vpack.c.bf16 %v24_v17, %v23_v48 }
0x14b7   :  { %1514 = vmatprep.subr.bf16.mxu0 %v1513_v5 }
0x14b8   :  { %1516 = vmatpush3.bf16.msra.mxu0 %v1513_v5 }
0x1522   :  { %v983_v21 = vpop.permute.xlu1 %982 }
0x1523   :  { %v985_v11 = vadd.f32 %v983_v21, %v975_v10 }
0x1525   :  { %1592 = vtanh.f32 %v985_v11 }
0x1526   :  { %v1012_v12 = vpop.permute.xlu1 %1011 }
0x1527   :  { %1460 = vmatprep.mubr.msk.f32.mxu1 %vm120_vm3, %v1012_v12  ;;  %1467 = vmatprep.mubr.msk.f32.mxu0 %vm120_vm3, %v1012_v12 }
0x152f   :  { %v1593_v20 = vpop.eup %1592 }
0x1530   :  { %988 = vrot.lane.b32.xlu0 %v1593_v20, %s1600_s1 }
0x15a2   :  { %v989_v22 = vpop.permute.xlu0 %988 }
0x15a3   :  { %v991_v24 = vmul.f32 %v1591_v4, %v989_v22 }
0x15a5   :  { %v992_v25 = vmul.f32 %v991_v24, %v991_v24  ;;  %v1004_v26 = vsel %vm1000_vm5, %v1003_v55, %v991_v24  ;;  %v1273_v55 = vrot.slane %v27_v33, %v1272_v52 }
0x15a6   :  { %1013 = vrot.lane.b32.xlu0 %v1004_v26, %s1601_s30 }
0x15a7   :  { %v994_v27 = vrot.slane %v992_v25, 6 }
0x15a9   :  { %v996_v28 = vadd.f32 %v994_v27, %v884_v57 }
0x15ab   :  { %1289 = vrot.lane.b32.xlu1 %v996_v28, %s1601_s30 }
0x1618   :  { %v1014_v29 = vpop.permute.xlu0 %1013 }
0x1619   :  { %1461 = vmatmul.mubr.msk.f32.vlgmr.msra.gmra.mrb[10].mxu1 %vm120_vm3, %v1014_v29  ;;  %1468 = vmatmul.mubr.msk.f32.vlgmr.msra.gmra.mrb[8].mxu0 %vm120_vm3, %v1014_v29 }
0x161a   :  { %1520 = vmatpush3.bf16.msra.mxu1 %v1517_v8  ;;  %1474 = vmatprep.mubr.msk.f32.mxu1 %vm120_vm3, %v1012_v12 }
0x161d   :  { %1475 = vmatmul.mubr.msk.f32.vlgmr.msra.gmra.mrb[12].mxu1 %vm120_vm3, %v1014_v29  ;;  %v1290_v30 = vpop.permute.xlu1 %1289 }
0x161e   :  { %v1293_v31 = vsel %vm1292_vm6, %v1290_v30, 0.0 }
0x161f   :  { %1294 = vadd.xlane.f32.xlu0 %v1293_v31 }
0x16ac   :  { %v1295_v60 = vpop.xlane.xlu0 %1294 }
0x16ad   :  { %1594 = vrsqrt.f32 %v1295_v60  ;;  %vm1298_vm7 = vcmp.eq.f32.partialorder %v1295_v60, inf  ;;  %v1301_v15 = vand.u32 2147483648, %v1295_v60  ;;  %vm1300_vm8 = vcmp.eq.f32.partialorder %v1295_v60, 0.0 }
0x16b7   :  { %v1595_v61 = vpop.eup %1594 }
0x16b8   :  { %v1297_v62 = vmul.f32 %v1595_v61, %v1295_v60 }
0x16ba   :  { %v1299_v63 = vsel %vm1298_vm7, %v1295_v60, %v1297_v62 }
0x16bb   :  { %v1302_v0 = vsel %vm1300_vm8, %v1301_v15, %v1299_v63 }
0x16bc   :  { %v1303_v1 = vsel %vm997_vm4, %v1302_v0, 0.0 }
0x16bd   :  { %v1304_v2 = vrot.slane %v1303_v1, 4 }
0x16bf   :  { %v1305_v4 = vadd.f32 %v1304_v2, %v1303_v1 }
0x16c1   :  { %v1306_v6 = vrot.slane %v1305_v4, 2 }
0x16c3   :  { %v1307_v7 = vadd.f32 %v1306_v6, %v1305_v4 }
0x16c5   :  { %v1308_v10 = vrot.slane %v1307_v7, 1 }
0x16c7   :  { %v1309_v12 = vadd.f32 %v1308_v10, %v1307_v7 }
0x16c9   :  { %v1310_v48 = vmul.f32 0.5, %v1309_v12 }
0x16ec   :  { %v1462_v35 = vpop.f32.mrb[10].mxu1  ;;  %v1469_v36 = vpop.f32.mrb[8].mxu0 }
0x16ed   :  { %v1085_v38 = vpop.f32.mrb[11].mxu1  ;;  %v1160_v39 = vpop.f32.mrb[9].mxu0  ;;  %v1259_v41 = vadd.f32 %v1469_v36, %v1247_v37  ;;  %v1091_v45 = vadd.f32 %v1462_v35, %v1008_v40 }
0x16ee   :  { %v1248_v23 = vadd.f32 %v1247_v37, %v1160_v39  ;;  %v1086_v47 = vadd.f32 %v1085_v38, %v1008_v40 }
0x16f0   :  { %v1476_v3 = vpop.f32.mrb[12].mxu1 }
0x16f1   :  { %v1261_v42 = vrot.slane %v1476_v3, 2  ;;  %v1235_v43 = vpop.f32.mrb[13].mxu1 }
0x16f2   :  { %v1250_v44 = vrot.slane %v1235_v43, 2 }
0x16f3   :  { %v1263_v46 = vadd.f32 %v1261_v42, %v1259_v41 }
0x16f4   :  { %v1252_v49 = vadd.f32 %v1250_v44, %v1248_v23 }
0x16f5   :  { %v1264_v50 = vmul.f32 %v1263_v46, %v1091_v45 }
0x16f6   :  { %v1253_v51 = vmul.f32 %v1252_v49, %v1086_v47 }
0x16f7   :  { %v1267_v56 = vrot.slane %v1264_v50, 4 }
0x16f8   :  { %v1256_v53 = vrot.slane %v1253_v51, 4 }
0x16fa   :  { %v1258_v54 = vadd.f32 %v1256_v53, %v1253_v51 }
0x16fc   :  { %v1265_v57 = vadd.f32 %v1264_v50, %v1258_v54 }
0x16fe   :  { %v1269_v58 = vadd.f32 %v1267_v56, %v1265_v57 }
0x1700   :  { %v1274_v59 = vmul.f32 %v1273_v55, %v1269_v58 }
0x1702   :  { %1276 = vrot.lane.b32.xlu1 %v1274_v59, %s1602_s2 }
0x1706   :  { %1280 = vrot.lane.b32.xlu1 %v1274_v59, %s1603_s18 }
0x170a   :  { %1284 = vrot.lane.b32.xlu1 %v1274_v59, %s1604_s19 }
0x1774   :  { %v1277_v9 = vpop.permute.xlu1 %1276 }
0x1775   :  { %v1279_v11 = vadd.f32 %v1277_v9, %v1274_v59 }
0x1778   :  { %v1281_v21 = vpop.permute.xlu1 %1280 }
0x1779   :  { %v1283_v13 = vadd.f32 %v1281_v21, %v1279_v11 }
0x177c   :  { %v1285_v14 = vpop.permute.xlu1 %1284 }
0x177d   :  { %v1287_v16 = vadd.f32 %v1285_v14, %v1283_v13 }
0x177f   :  { %v1313_v17 = vsel %vm1312_vm9, %v1287_v16, %v1310_v48 }
0x1780   :  { %1315 = vst.msk [vmem:[%s1805_s3] sm:$0x3] %vm1314_vm10, %v1313_v17 }

</bundles_post_ra>
